<compile_context>
chip_gen: v7x
topology: tpu7x:2x2x1
jax: 0.10.0
libtpu: 0.0.40
codegen_flags: <defaults>
</compile_context>

<pallas_src>
import functools

import jax
import jax.numpy as jnp
import numpy as np
from jax.experimental import pallas as pl
from jax.experimental.pallas import tpu as pltpu

P_DROP = 0.33
LEAKY_SLOPE = 0.2
BN_EPS = 1e-5
KSIZE = 4
STRIDE = 2
PAD = 1

INV_KEEP = 1.0 / (1.0 - P_DROP)
DROP_THRESHOLD = int(P_DROP * (1 << 32))  # keep iff hash_bits >= threshold


def _round_up(x, m):
    return (x + m - 1) // m * m


def _auto_tile_m(M, K, OC_pad):
    # Budget per-step rows so that double-buffered patches (bf16) + y (f32)
    # + out (f32) stay well under the 32 MiB default scoped-VMEM limit.
    budget = 6 * 1024 * 1024
    per_row = K * 2 + 2 * OC_pad * 4
    tm = budget // max(per_row, 1)
    tm = max(8, min(1024, (tm // 8) * 8))
    return int(min(tm, _round_up(M, 8)))


# ----------------------------------------------------------------------------
# Pass 1: conv matmul + global BN statistics accumulation
# ----------------------------------------------------------------------------
def conv_stats_kernel(xp_ref, w_ref, y_ref, sum_ref, ssq_ref):
    # (tile_m, K) bf16 x (K, OC_pad) bf16 -> (tile_m, OC_pad) f32 on the MXU.
    y = jnp.dot(xp_ref[...], w_ref[...], preferred_element_type=jnp.float32)
    y_ref[...] = y

    @pl.when(pl.program_id(0) == 0)
    def _():
        sum_ref[...] = jnp.zeros_like(sum_ref)
        ssq_ref[...] = jnp.zeros_like(ssq_ref)

    # Padded M rows come from zero-padded patches -> y == 0 there, so they
    # contribute nothing to the sums; we divide by the true M in the wrapper.
    sum_ref[...] += jnp.sum(y, axis=0, keepdims=True)
    ssq_ref[...] += jnp.sum(y * y, axis=0, keepdims=True)


# ----------------------------------------------------------------------------
# Pass 2: BN affine (folded) + LeakyReLU + dropout (integer-threshold hash PRNG)
# ----------------------------------------------------------------------------
def bn_act_dropout_kernel(seed_ref, y_ref, scale_ref, shift_ref, o_ref, *, tile_m):
    y = y_ref[...]                                   # (tile_m, OC_pad) f32
    yn = y * scale_ref[...] + shift_ref[...]
    act = jnp.where(yn >= 0.0, yn, jnp.float32(LEAKY_SLOPE) * yn)

    # Stateless counter-based hash on the *global* (row, col, seed) so the mask
    # is independent of the tiling and differs per tile.
    base = jnp.uint32(tile_m) * pl.program_id(0).astype(jnp.uint32)
    rows = jax.lax.broadcasted_iota(jnp.uint32, act.shape, 0) + base
    cols = jax.lax.broadcasted_iota(jnp.uint32, act.shape, 1)
    seed = seed_ref[0].astype(jnp.uint32)

    h = (rows * jnp.uint32(0x9E3779B1)
         + cols * jnp.uint32(0x85EBCA77)
         + seed * jnp.uint32(0xC2B2AE3D)
         + jnp.uint32(0x27D4EB2F))
    h = h ^ (h >> 15)
    h = h * jnp.uint32(0x2C1B3C6D)
    h = h ^ (h >> 12)
    h = h * jnp.uint32(0x297A2D39)
    h = h ^ (h >> 15)

    keep = h >= jnp.uint32(DROP_THRESHOLD)
    o_ref[...] = jnp.where(keep, act * jnp.float32(INV_KEEP), jnp.float32(0.0))


# ----------------------------------------------------------------------------
# Wrapper
# ----------------------------------------------------------------------------
def unet_compress_forward(x_nchw, w_oihw, gamma, beta, seed, *, tile_m=None):
    """x_nchw: (N, C, H, W) float32.  Returns (N, OC, OH, OW) float32."""
    N, C, H, W = x_nchw.shape
    OC = w_oihw.shape[0]
    OH = (H + 2 * PAD - KSIZE) // STRIDE + 1
    OW = (W + 2 * PAD - KSIZE) // STRIDE + 1
    M = N * OH * OW
    K = KSIZE * KSIZE * C
    OC_pad = _round_up(OC, 128)

    if tile_m is None:
        tile_m = _auto_tile_m(M, K, OC_pad)
    tile_m = _round_up(max(8, min(int(tile_m), _round_up(M, 8))), 8)
    M_pad = _round_up(M, tile_m)
    num_tiles = M_pad // tile_m

    # im2col (glue, plain JAX): NCHW -> NHWC (bf16 halves DMA bytes) -> patches.
    x_bf = jnp.transpose(x_nchw, (0, 2, 3, 1)).astype(jnp.bfloat16)
    xp = jnp.pad(x_bf, ((0, 0), (PAD, PAD), (PAD, PAD), (0, 0)))
    cols = []
    for kh in range(KSIZE):
        for kw in range(KSIZE):
            cols.append(xp[:, kh:kh + STRIDE * OH:STRIDE,
                             kw:kw + STRIDE * OW:STRIDE, :])      # (N, OH, OW, C)
    patches = jnp.stack(cols, axis=3).reshape(M, K)               # (M, K) bf16
    if M_pad > M:
        patches = jnp.pad(patches, ((0, M_pad - M), (0, 0)))      # zero rows

    # weight: (OC, IC, KH, KW) -> (KH, KW, IC, OC) -> (K, OC_pad), bf16, zero-padded OC.
    w_mat = jnp.transpose(w_oihw, (2, 3, 1, 0)).reshape(K, OC).astype(jnp.bfloat16)
    if OC_pad > OC:
        w_mat = jnp.pad(w_mat, ((0, 0), (0, OC_pad - OC)))

    # ---------------- pass 1: conv + BN stats ----------------
    y, ch_sum, ch_ssq = pl.pallas_call(
        conv_stats_kernel,
        grid=(num_tiles,),
        in_specs=[
            pl.BlockSpec((tile_m, K), lambda i: (i, 0)),          # patches tile
            pl.BlockSpec((K, OC_pad), lambda i: (0, 0)),          # weights, resident
        ],
        out_specs=(
            pl.BlockSpec((tile_m, OC_pad), lambda i: (i, 0)),     # y tile
            pl.BlockSpec((1, OC_pad), lambda i: (0, 0)),          # sum (resident acc)
            pl.BlockSpec((1, OC_pad), lambda i: (0, 0)),          # sumsq (resident acc)
        ),
        out_shape=(
            jax.ShapeDtypeStruct((M_pad, OC_pad), jnp.float32),
            jax.ShapeDtypeStruct((1, OC_pad), jnp.float32),
            jax.ShapeDtypeStruct((1, OC_pad), jnp.float32),
        ),
        compiler_params=pltpu.CompilerParams(
            dimension_semantics=("arbitrary",),
            vmem_limit_bytes=48 * 1024 * 1024),
    )(patches, w_mat)

    # Fold batch stats + gamma/beta into per-channel scale/shift (tiny glue).
    m = jnp.float32(M)
    mean = ch_sum / m
    var = jnp.maximum(ch_ssq / m - mean * mean, 0.0)
    gamma_p = jnp.pad(gamma.astype(jnp.float32), (0, OC_pad - OC)).reshape(1, OC_pad)
    beta_p = jnp.pad(beta.astype(jnp.float32), (0, OC_pad - OC)).reshape(1, OC_pad)
    scale = gamma_p * jax.lax.rsqrt(var + BN_EPS)
    shift = beta_p - mean * scale

    # ---------------- pass 2: BN affine + LeakyReLU + dropout ----------------
    seed_arr = jnp.asarray([seed], dtype=jnp.int32)
    out_flat = pl.pallas_call(
        functools.partial(bn_act_dropout_kernel, tile_m=tile_m),
        grid=(num_tiles,),
        in_specs=[
            pl.BlockSpec(memory_space=pltpu.MemorySpace.SMEM),    # seed scalar
            pl.BlockSpec((tile_m, OC_pad), lambda i: (i, 0)),     # y tile
            pl.BlockSpec((1, OC_pad), lambda i: (0, 0)),          # scale, resident
            pl.BlockSpec((1, OC_pad), lambda i: (0, 0)),          # shift, resident
        ],
        out_specs=pl.BlockSpec((tile_m, OC_pad), lambda i: (i, 0)),
        out_shape=jax.ShapeDtypeStruct((M_pad, OC_pad), jnp.float32),
        compiler_params=pltpu.CompilerParams(
            dimension_semantics=("parallel",),
            vmem_limit_bytes=48 * 1024 * 1024),
    )(seed_arr, y, scale, shift)

    # Slice off M / OC padding; return PyTorch NCHW to match the module.
    out = out_flat[:M, :OC].reshape(N, OH, OW, OC)
    return jnp.transpose(out, (0, 3, 1, 2))


if __name__ == "__main__":
    # Small deterministic config consistent with the module:
    # in_size=4, out_size=8, x: (2, 4, 16, 16)
    key = jax.random.PRNGKey(0)
    k_x, k_w, k_g, k_b = jax.random.split(key, 4)

    N, IN_SIZE, H, W = 2, 4, 16, 16
    OUT_SIZE = 8

    x = jax.random.normal(k_x, (N, IN_SIZE, H, W), dtype=jnp.float32)
    w = jax.random.normal(k_w, (OUT_SIZE, IN_SIZE, KSIZE, KSIZE),
                          dtype=jnp.float32) * 0.1
    gamma = 1.0 + 0.1 * jax.random.normal(k_g, (OUT_SIZE,), dtype=jnp.float32)
    beta = 0.05 * jax.random.normal(k_b, (OUT_SIZE,), dtype=jnp.float32)

    # tile_m=32 -> 4 M-tiles: exercises the tiled BN-stats accumulation path.
    out = unet_compress_forward(x, w, gamma, beta, seed=1234, tile_m=32)
    out = jax.block_until_ready(out)

    # --- sanity check vs plain-JAX reference (conv + train-mode BN + LeakyReLU).
    # Reference uses bf16-quantized x/w to match the kernel's MXU input precision.
    # Dropout is stochastic, so every kernel output must equal either 0 or
    # ref / (1 - p) element-wise.
    xq = x.astype(jnp.bfloat16).astype(jnp.float32)
    wq = w.astype(jnp.bfloat16).astype(jnp.float32)
    ref_conv = jax.lax.conv_general_dilated(
        xq, wq, window_strides=(STRIDE, STRIDE),
        padding=((PAD, PAD), (PAD, PAD)),
        dimension_numbers=("NCHW", "OIHW", "NCHW"))
    mu = ref_conv.mean(axis=(0, 2, 3), keepdims=True)
    var = ref_conv.var(axis=(0, 2, 3), keepdims=True)
    ref_bn = (ref_conv - mu) * jax.lax.rsqrt(var + BN_EPS) \
        * gamma.reshape(1, -1, 1, 1) + beta.reshape(1, -1, 1, 1)
    ref_act = jnp.where(ref_bn >= 0.0, ref_bn, LEAKY_SLOPE * ref_bn)
    scaled = ref_act / (1.0 - P_DROP)

    out_np = np.asarray(out)
    scaled_np = np.asarray(scaled)
    assert out_np.shape == (N, OUT_SIZE, H // 2, W // 2)
    assert np.all(np.isfinite(out_np))

    tol = 2e-3 + 2e-3 * np.abs(scaled_np)
    ok = np.all(np.minimum(np.abs(out_np), np.abs(out_np - scaled_np)) <= tol)
    assert ok, "kernel output does not match {0, ref/(1-p)} element-wise"

    kept_frac = float(np.mean(np.abs(out_np) > 0))
    assert 0.3 < kept_frac < 0.95, f"dropout keep fraction looks wrong: {kept_frac}"

    print("KERNEL_OK")
</pallas_src>

<mosaic_0001>
module attributes {stable_mosaic.version = 11 : i64} {
  func.func @conv_stats_kernel(%arg0: i32, %arg1: memref<32x64xbf16, #tpu.memory_space<vmem>>, %arg2: memref<64x128xbf16, #tpu.memory_space<vmem>>, %arg3: memref<32x128xf32, #tpu.memory_space<vmem>>, %arg4: memref<1x128xf32, #tpu.memory_space<vmem>>, %arg5: memref<1x128xf32, #tpu.memory_space<vmem>>) attributes {dimension_semantics = [#tpu.dimension_semantics<arbitrary>], iteration_bounds = array<i64: 4>, scalar_prefetch = 0 : i64, scratch_operands = 0 : i64, tpu.core_type = #tpu.core_type<tc>, window_params = [{transform_indices = @transform_0, window_bounds = array<i64: 32, 64>}, {pipeline_mode = #tpu.pipeline_mode<synchronous>, transform_indices = @transform_1, window_bounds = array<i64: 64, 128>}, {transform_indices = @transform_2, window_bounds = array<i64: 32, 128>}, {pipeline_mode = #tpu.pipeline_mode<synchronous>, transform_indices = @transform_3, window_bounds = array<i64: 1, 128>}, {pipeline_mode = #tpu.pipeline_mode<synchronous>, transform_indices = @transform_4, window_bounds = array<i64: 1, 128>}]} {
    %c0 = arith.constant 0 : index
    %c0_0 = arith.constant 0 : index
    %0 = vector.load %arg1[%c0, %c0_0] : memref<32x64xbf16, #tpu.memory_space<vmem>>, vector<32x64xbf16>
    %c0_1 = arith.constant 0 : index
    %c0_2 = arith.constant 0 : index
    %1 = vector.load %arg2[%c0_1, %c0_2] : memref<64x128xbf16, #tpu.memory_space<vmem>>, vector<64x128xbf16>
    %cst = arith.constant dense<0.000000e+00> : vector<32x128xf32>
    %2 = tpu.matmul %0, %1, %cst {dimension_numbers = #tpu.dot_dimension_numbers<[1], [0], [0], [1], [0, 0, 1, 1], [], []>} : vector<32x64xbf16>, vector<64x128xbf16>, vector<32x128xf32> -> vector<32x128xf32>
    %c0_3 = arith.constant 0 : index
    %c0_4 = arith.constant 0 : index
    %3 = vector.load %arg3[%c0_3, %c0_4] : memref<32x128xf32, #tpu.memory_space<vmem>>, vector<32x128xf32>
    tpu.vector_store %arg3[%c0_3, %c0_4], %2 {strides = array<i32>} : memref<32x128xf32, #tpu.memory_space<vmem>>, vector<32x128xf32>,
    %c0_i32 = arith.constant 0 : i32
    %4 = arith.cmpi eq, %arg0, %c0_i32 : i32
    %5 = arith.extui %4 : i1 to i32
    %c0_i32_5 = arith.constant 0 : i32
    %6 = arith.cmpi ne, %5, %c0_i32_5 : i32
    scf.if %6 {
      %cst_16 = arith.constant 0.000000e+00 : f32
      %18 = vector.broadcast %cst_16 : f32 to vector<1x128xf32>
      %c0_17 = arith.constant 0 : index
      %c0_18 = arith.constant 0 : index
      %19 = vector.load %arg4[%c0_17, %c0_18] : memref<1x128xf32, #tpu.memory_space<vmem>>, vector<1x128xf32>
      tpu.vector_store %arg4[%c0_17, %c0_18], %18 {strides = array<i32>} : memref<1x128xf32, #tpu.memory_space<vmem>>, vector<1x128xf32>,
      %cst_19 = arith.constant 0.000000e+00 : f32
      %20 = vector.broadcast %cst_19 : f32 to vector<1x128xf32>
      %c0_20 = arith.constant 0 : index
      %c0_21 = arith.constant 0 : index
      %21 = vector.load %arg5[%c0_20, %c0_21] : memref<1x128xf32, #tpu.memory_space<vmem>>, vector<1x128xf32>
      tpu.vector_store %arg5[%c0_20, %c0_21], %20 {strides = array<i32>} : memref<1x128xf32, #tpu.memory_space<vmem>>, vector<1x128xf32>,
    } else {
    }
    %c0_6 = arith.constant 0 : index
    %c0_7 = arith.constant 0 : index
    %7 = vector.load %arg4[%c0_6, %c0_7] : memref<1x128xf32, #tpu.memory_space<vmem>>, vector<1x128xf32>
    %cst_8 = arith.constant dense<0.000000e+00> : vector<128xf32>
    %8 = vector.multi_reduction <add>, %2, %cst_8 [0] : vector<32x128xf32> to vector<128xf32>
    %9 = vector.shape_cast %8 : vector<128xf32> to vector<1x128xf32>
    %10 = arith.addf %7, %9 : vector<1x128xf32>
    %c0_9 = arith.constant 0 : index
    %c0_10 = arith.constant 0 : index
    %11 = vector.load %arg4[%c0_9, %c0_10] : memref<1x128xf32, #tpu.memory_space<vmem>>, vector<1x128xf32>
    tpu.vector_store %arg4[%c0_9, %c0_10], %10 {strides = array<i32>} : memref<1x128xf32, #tpu.memory_space<vmem>>, vector<1x128xf32>,
    %c0_11 = arith.constant 0 : index
    %c0_12 = arith.constant 0 : index
    %12 = vector.load %arg5[%c0_11, %c0_12] : memref<1x128xf32, #tpu.memory_space<vmem>>, vector<1x128xf32>
    %13 = arith.mulf %2, %2 : vector<32x128xf32>
    %cst_13 = arith.constant dense<0.000000e+00> : vector<128xf32>
    %14 = vector.multi_reduction <add>, %13, %cst_13 [0] : vector<32x128xf32> to vector<128xf32>
    %15 = vector.shape_cast %14 : vector<128xf32> to vector<1x128xf32>
    %16 = arith.addf %12, %15 : vector<1x128xf32>
    %c0_14 = arith.constant 0 : index
    %c0_15 = arith.constant 0 : index
    %17 = vector.load %arg5[%c0_14, %c0_15] : memref<1x128xf32, #tpu.memory_space<vmem>>, vector<1x128xf32>
    tpu.vector_store %arg5[%c0_14, %c0_15], %16 {strides = array<i32>} : memref<1x128xf32, #tpu.memory_space<vmem>>, vector<1x128xf32>,
    return
  }
  func.func @transform_0(%arg0: i32) -> (i32, i32) {
    %c0_i32 = arith.constant 0 : i32
    %c0_i32_0 = arith.constant 0 : i32
    return %arg0, %c0_i32 : i32, i32
  }
  func.func @transform_1(%arg0: i32) -> (i32, i32) {
    %c0_i32 = arith.constant 0 : i32
    %c0_i32_0 = arith.constant 0 : i32
    %c0_i32_1 = arith.constant 0 : i32
    return %c0_i32, %c0_i32_0 : i32, i32
  }
  func.func @transform_2(%arg0: i32) -> (i32, i32) {
    %c0_i32 = arith.constant 0 : i32
    %c0_i32_0 = arith.constant 0 : i32
    return %arg0, %c0_i32 : i32, i32
  }
  func.func @transform_3(%arg0: i32) -> (i32, i32) {
    %c0_i32 = arith.constant 0 : i32
    %c0_i32_0 = arith.constant 0 : i32
    %c0_i32_1 = arith.constant 0 : i32
    return %c0_i32, %c0_i32_0 : i32, i32
  }
  func.func @transform_4(%arg0: i32) -> (i32, i32) {
    %c0_i32 = arith.constant 0 : i32
    %c0_i32_0 = arith.constant 0 : i32
    %c0_i32_1 = arith.constant 0 : i32
    return %c0_i32, %c0_i32_0 : i32, i32
  }
}

</mosaic_0001>

<bundles_post_ra>
// kernel: tpu_custom_call.1
= control target key start
LH: loop header
LB: loop body
LE: loop exit
PB: predicated region body
PF: predicated region fallthrough
CT: control target
= control target key end

     0   :  { %10 = vsyncpa [#allocation3], 0  ;;  %s881_s0 = inlined_call_operand.vmem [shape: bf16[128,64], index: 0, kind: input, shape index: {}]   ;;  %s882_s1 = inlined_call_operand.vmem [shape: bf16[64,128], index: 1, kind: input, shape index: {}]   ;;  %s883_s2 = inlined_call_operand.hbm [shape: f32[128,128], index: 2, kind: output, shape index: {0}]   ;;  %s884_s3 = inlined_call_operand.hbm [shape: f32[1,128], index: 3, kind: output, shape index: {1}]   ;;  %s885_s4 = inlined_call_operand.hbm [shape: f32[1,128], index: 4, kind: output, shape index: {2}]  }
   0x1   :  { %12 = vsyncpa [#allocation3 + $0x1], 0 }
   0x2   :  { %13 = vsyncpa [#allocation5], 0  ;;  %s712_s15 = smov 0   ;;  %s714_s16 = smov 0  }
   0x3   :  { %s716_s17 = smov 0   ;;  %s718_s18 = smov 0  }
   0x4 LB: > { %s733_s19 = sadd.s32 4294967295, %s679_s18   ;;  %s455_s20 = sadd.s32 4294967294, %s679_s18   ;;  %s679_s18 = sphi %s718_s18, %s891_s18   ;;  %s675_s17 = sphi %s716_s17, %s890_s17   ;;  %s671_s16 = sphi %s714_s16, %s889_s16   ;;  %s667_s15 = sphi %s712_s15, %s888_s15  }
   0x5   : > { %s737_s21 = sadd.s32 1, %s679_s18   ;;  %s73_s22 = sadd.s32 1, %s675_s17 }
   0x6   : > { %s70_s23 = ssub.s32 %s679_s18, %s737_s21  ;;  %p83_p0 = scmp.ne.s32.totalorder %s675_s17, %s671_s16 }
   0x7   : > { %p71_p1 = scmp.eq.s32.totalorder %s70_s23, 0  ;;  %p84_p2 = scmp.eq.s32.totalorder %s733_s19, 3 }
   0x8   : > { %p89_p3 = scmp.ne.s32.totalorder %s671_s16, %s667_s15  ;;  %p90_p4 = scmp.eq.s32.totalorder %s455_s20, 3 }
   0x9   : > { %s748_s24 = scalar_select %p71_p1, %s675_s17, %s73_s22  }
   0xa   : > { %p752_p5 = por %p84_p2, %p83_p0  ;;  %p756_p6 = por %p90_p4, %p89_p3 }
   0xb   : > { %p458_p7 = scmp.ge.s32.totalorder %s679_s18, 1  ;;  %p162_p8 = scmp.lt.s32.totalorder %s679_s18, 5 }
   0xd   : > { %p163_p9 = pnand %p458_p7, %p162_p8 }
   0xe   : > { %v555_v0 = vld [vmem:[%s882_s1] sm:$0xff] (!%p163_p9)   ;;  %s460_s29 = sshll.u32 (!%p163_p9), %s733_s19, 2  ;;  %v556_v1 = vld [vmem:[%s882_s1 + $0x8] sm:$0xff] (!%p163_p9)   ;;  %v557_v2 = vld [vmem:[%s882_s1 + $0x10] sm:$0xff] (!%p163_p9)   ;;  %vm242_vm0 = vcmask (!%p163_p9), 523264   ;;  %s181_s14 = sand.u32 (!%p163_p9), 1, %s671_s16  }
   0xf   : > { %166 = sbr.rel (%p163_p9) target bundleno = 318 (0x13e), region = 28  ;;  %p189_p10 = scmp.lt.s32.totalorder (!%p163_p9), %s460_s29, 15  ;;  %487 = vmatprep.subr.bf16.mxu0 (!%p163_p9), %v555_v0  ;;  %v558_v4 = vld [vmem:[%s882_s1 + $0x18] sm:$0xff] (!%p163_p9)  }
  0x10   : > { %488 = vmatpush3.bf16.msra.mxu0 (!%p163_p9), %v555_v0  ;;  %s459_s20 = sshll.u32 (!%p163_p9), %s181_s14, 5  ;;  %p470_p11 = scmp.ne.s32.totalorder (!%p163_p9), %s733_s19, 0 }
  0x11   : > { %489 = vmatprep.subr.bf16.mxu0 (!%p163_p9), %v556_v1  ;;  %s183_s22 = scalar_lea.vmem (!%p163_p9), [#allocation2], %s459_s20 }
  0x14   : > { %490 = vmatpush3.bf16.msra.mxu0 (!%p163_p9), %v556_v1 }
  0x15   : > { %491 = vmatprep.subr.bf16.mxu0 (!%p163_p9), %v557_v2 }
  0x16   : > { %s893_s29 = smov (!%p189_p10, %s460_s29), 15  ;;  %v681_v10 = vmov (!%p470_p11), 0.0  }
  0x17   : > { %s461_s8 = sshll.u32 %s893_s29, 2  ;;  %306 = vst [vmem:[#allocation4] sm:$0x1] (!%p470_p11), %v681_v10  ;;  %307 = vst [vmem:[#allocation6] sm:$0x1] (!%p470_p11), %v681_v10 }
  0x18   : > { %s192_s11 = scalar_lea.vmem %s881_s0, %s461_s8  ;;  %492 = vmatpush3.bf16.msra.mxu0 %v557_v2 }
  0x19   : > { %v559_v3 = vld [vmem:[%s192_s11] sm:$0xff]   ;;  %493 = vmatprep.subr.bf16.mxu0 %v558_v4  ;;  %v560_v5 = vld [vmem:[%s192_s11 + $0x8] sm:$0xff]  }
  0x1a   : > { %495 = vmatprep.mubr.msk.bf16.mxu0 %vm242_vm0, %v559_v3 }
  0x1c   : > { %494 = vmatpush3.bf16.msra.mxu0 %v558_v4 }
  0x1f   : > { %496 = vmatmul.mubr.msk.bf16.vlgmr.msra.gmra.mrb[0].mxu0 %vm242_vm0, %v560_v5 }
  0xf0   : > { %305 = sbr.rel (%p470_p11) target bundleno = 247 (0xf7), region = 32 }
  0xf2   : > { %v497_v6 = vpop.f32.mrb[0].mxu0 }
  0xf3   : > { %300 = vst [vmem:[%s183_s22 + $0x10] sm:$0xff] %v497_v6  ;;  %v283_v7 = vpop.f32.mrb[1].mxu0 }
  0xf4   : > { %298 = vst [vmem:[%s183_s22] sm:$0xff] %v283_v7  ;;  %v498_v8 = vpop.f32.mrb[2].mxu0 }
  0xf5   : > { %301 = vst [vmem:[%s183_s22 + $0x18] sm:$0xff] %v498_v8  ;;  %v286_v9 = vpop.f32.mrb[3].mxu0 }
  0xf6   : > { %299 = vst [vmem:[%s183_s22 + $0x8] sm:$0xff] %v286_v9 }
  0xf7 PF: > { %v309_v11 = vadd.f32 %v286_v9, %v283_v7  ;;  %v321_v12 = vmul.f32 %v283_v7, %v283_v7  ;;  %v322_v13 = vmul.f32 %v286_v9, %v286_v9  ;;  %v323_v14 = vmul.f32 %v497_v6, %v497_v6  ;;  %s480_s23 = sshll.u32 %s733_s19, 9  ;;  %s350_s30 = sshll.u32 %s183_s22, 4  ;;  %s788_s30 = int_to_ptr.vmem [resolvable:$true] %s350_s30 }
  0xf8   : > { %v324_v16 = vmul.f32 %v498_v8, %v498_v8  ;;  %s786_s29 = scalar_lea.hbm %s883_s2, %s480_s23  ;;  %s792_s5 = scalar_lea.sflag [#allocation3], %s181_s14 }
  0xf9   : > { %v310_v15 = vadd.f32 %v497_v6, %v309_v11  ;;  %v325_v17 = vadd.f32 %v322_v13, %v321_v12  ;;  %s561_s6 = scalar_lea.vmem %s788_s30, 512  ;;  %s682_s7 = smov [#allocation2]  }
  0xfa   : > { %p562_p12 = scmp.ne.s32.totalorder %s788_s30, %s561_s6  ;;  %s565_s8 = sshll.u32 %s682_s7, 4  ;;  %s566_s8 = int_to_ptr.vmem [resolvable:$false] %s565_s8 }
  0xfb   : > { %v311_v18 = vadd.f32 %v498_v8, %v310_v15  ;;  %v326_v19 = vadd.f32 %v325_v17, %v323_v14  ;;  %s567_s9 = scalar_lea.vmem %s566_s8, 1024  ;;  %p568_p1 = scmp.lt.s32.totalorder %s788_s30, %s566_s8 }
  0xfc   : > { %p563_p13 = pnand %p562_p12, %p752_p5  ;;  %p569_p3 = scmp.lt.s32.totalorder %s567_s9, %s561_s6 }
  0xfd   : > { %v312_v20 = vrot.slane %v311_v18, 4  ;;  %v327_v21 = vadd.f32 %v326_v19, %v324_v16 }
  0xfe   : > { %p564_p0 = pneg %p563_p13  ;;  %p570_p4 = por %p569_p3, %p568_p1 }
 0x100   : > { %p571_p7 = pnand %p570_p4, %p564_p0 }
 0x102   : > { %574 = shalt.err (!%p571_p7)
}
 0x103   : > { %s575_s10 = scalar_lea.hbm %s786_s29, 512  ;;  %s579_s13 = scalar_lea.hbm %s883_s2, 2048 }
 0x104   : > { %p576_p8 = scmp.ne.s32.totalorder %s786_s29, %s575_s10  ;;  %p580_p11 = scmp.lt.u32.totalorder %s786_s29, %s883_s2 }
 0x105   : > { %p581_p12 = scmp.lt.u32.totalorder %s579_s13, %s575_s10  ;;  %p583_p0 = scmp.lt.u32.totalorder %s575_s10, %s786_s29 }
 0x106   : > { %p577_p9 = pnand %p576_p8, %p752_p5 }
 0x107   : > { %p582_p13 = por %p581_p12, %p580_p11 }
 0x108   : > { %p578_p10 = pneg %p577_p9 }
 0x109   : > { %p584_p1 = por %p583_p0, %p582_p13 }
 0x10b   : > { %p585_p3 = pnand %p584_p1, %p578_p10 }
 0x10d   : > { %588 = shalt.err (!%p585_p3)
}
 0x10e   : > { %s683_s22 = smov 128   ;;  %s684_s23 = smov 8   ;;  %v313_v22 = vadd.f32 %v312_v20, %v311_v18  ;;  %v328_v23 = vrot.slane %v327_v21, 4  ;;  %v308_v30 = vld [vmem:[#allocation4] sm:$0x1] }
 0x10f   : > { %499 = dma.vmem_to_hbm [thread:$0]  (%p752_p5), %s788_s30, 512, %s786_s29, %s792_s5, %s683_s22, %s683_s22, %s684_s23   ;;  %v320_v33 = vld [vmem:[#allocation6] sm:$0x1] }
 0x110   : > { %v314_v24 = vrot.slane %v313_v22, 2  ;;  %v329_v25 = vadd.f32 %v328_v23, %v327_v21  ;;  %s685_s27 = smov [#allocation4]   ;;  %s686_s6 = smov [#allocation6]  }
 0x111   : > { %s364_s28 = sshll.u32 %s685_s27, 4  ;;  %s375_s7 = sshll.u32 %s686_s6, 4  ;;  %s365_s28 = int_to_ptr.vmem [resolvable:$true] %s364_s28  ;;  %s816_s7 = int_to_ptr.vmem [resolvable:$true] %s375_s7 }
 0x112   : > { %v315_v26 = vadd.f32 %v314_v24, %v313_v22  ;;  %v330_v27 = vrot.slane %v329_v25, 2  ;;  %s589_s25 = scalar_lea.vmem %s365_s28, 16  ;;  %s595_s29 = scalar_lea.vmem %s365_s28, 32 }
 0x113   : > { %p590_p5 = scmp.ne.s32.totalorder %s365_s28, %s589_s25  ;;  %p596_p8 = scmp.lt.s32.totalorder %s365_s28, %s365_s28 }
 0x114   : > { %v316_v28 = vrot.slane %v315_v26, 1  ;;  %v331_v29 = vadd.f32 %v330_v27, %v329_v25  ;;  %p597_p9 = scmp.lt.s32.totalorder %s595_s29, %s589_s25 }
 0x115   : > { %p591_p4 = pnand %p590_p5, %p84_p2 }
 0x116   : > { %v317_v31 = vadd.f32 %v316_v28, %v315_v26  ;;  %v332_v32 = vrot.slane %v331_v29, 1  ;;  %p598_p10 = por %p597_p9, %p596_p8 }
 0x117   : > { %p592_p7 = pneg %p591_p4 }
 0x118   : > { %v318_v34 = vadd.f32 %v317_v31, %v308_v30  ;;  %v333_v35 = vadd.f32 %v332_v32, %v331_v29 }
 0x119   : > { %p599_p11 = pnand %p598_p10, %p592_p7 }
 0x11a   : > { %319 = vst [vmem:[#allocation4] sm:$0x1] %v318_v34  ;;  %v334_v36 = vadd.f32 %v333_v35, %v320_v33 }
 0x11b   : > { %602 = shalt.err (!%p599_p11)
}
 0x11c   : > { %s603_s8 = scalar_lea.hbm %s884_s3, 16 }
 0x11d   : > { %p604_p12 = scmp.ne.s32.totalorder %s884_s3, %s603_s8  ;;  %p609_p1 = scmp.lt.u32.totalorder %s603_s8, %s884_s3 }
 0x11f   : > { %p605_p13 = pnand %p604_p12, %p84_p2 }
 0x121   : > { %p606_p0 = pneg %p605_p13 }
 0x123   : > { %p611_p3 = pnand %p609_p1, %p606_p0 }
 0x125   : > { %614 = shalt.err (!%p611_p3)
}
 0x126   : > { %501 = dma.vmem_to_hbm [thread:$0]  (%p84_p2), %s365_s28, 16, %s884_s3, [#allocation5]   ;;  %335 = vst [vmem:[#allocation6] sm:$0x1] %v334_v36 }
 0x127   : > { %s615_s20 = scalar_lea.vmem %s816_s7, 16  ;;  %s621_s22 = scalar_lea.vmem %s816_s7, 32 }
 0x128   : > { %p616_p5 = scmp.ne.s32.totalorder %s816_s7, %s615_s20  ;;  %p622_p8 = scmp.lt.s32.totalorder %s816_s7, %s816_s7 }
 0x129   : > { %p623_p9 = scmp.lt.s32.totalorder %s621_s22, %s615_s20 }
 0x12a   : > { %p617_p4 = pnand %p616_p5, %p84_p2 }
 0x12b   : > { %p624_p10 = por %p623_p9, %p622_p8 }
 0x12c   : > { %p618_p7 = pneg %p617_p4 }
 0x12e   : > { %p625_p11 = pnand %p624_p10, %p618_p7 }
 0x130   : > { %628 = shalt.err (!%p625_p11)
}
 0x131   : > { %s629_s6 = scalar_lea.hbm %s885_s4, 16 }
 0x132   : > { %p630_p12 = scmp.ne.s32.totalorder %s885_s4, %s629_s6  ;;  %p635_p1 = scmp.lt.u32.totalorder %s629_s6, %s885_s4 }
 0x134   : > { %p631_p13 = pnand %p630_p12, %p84_p2 }
 0x136   : > { %p632_p0 = pneg %p631_p13 }
 0x138   : > { %p637_p3 = pnand %p635_p1, %p632_p0 }
 0x13a   : > { %640 = shalt.err (!%p637_p3)
}
 0x13b   : > { %503 = dma.vmem_to_hbm [thread:$0]  (%p84_p2), %s816_s7, 16, %s885_s4, [#allocation5]  }
 0x13c   : > { %658 = dma.done.wait (%p84_p2), [#allocation5], 32  }
 0x13d   : > { %660 = vsyncadd (%p84_p2), [#allocation5], 4294967264 }
 0x13e PF: > { %p517_p5 = scmp.ge.s32.totalorder %s679_s18, 2  ;;  %s395_s9 = sand.u32 1, %s667_s15  }
 0x13f   : > { %s396_s10 = scalar_lea.sflag [#allocation3], %s395_s9 }
 0x140   : > { %p510_p4 = pnand %p517_p5, %p756_p6 }
 0x142   : > { %662 = dma.done.wait (!%p510_p4), %s396_s10, 512  }
 0x143   : > { %664 = vsyncadd (!%p510_p4), %s396_s10, 4294966784  ;;  %p16_p7 = scmp.ge.s32.totalorder %s737_s21, 6   ;;  %s888_s15 = smov %s671_s16 }
 0x144   : > { %s889_s16 = smov %s675_s17  ;;  %s890_s17 = smov %s748_s24 }
 0x145   : > { %s891_s18 = smov %s737_s21  ;;  %18 = sbr.rel (!%p16_p7) target bundleno = 4 (0x4), region = 83 }
 0x14c   :  { %401 = vsyncpa [#allocation3], 1 }
 0x14d   :  { %403 = vsyncpa [#allocation3 + $0x1], 1 }
 0x14e   :  { %404 = vsyncpa [#allocation5], 1 }

</bundles_post_ra>
